<compile_context>
chip_gen: v7x
topology: tpu7x:2x2x1
jax: 0.10.0
libtpu: 0.0.40
codegen_flags: <defaults>
</compile_context>

<pallas_src>
import jax
import jax.numpy as jnp
from jax.experimental import pallas as pl
from jax.experimental.pallas import tpu as pltpu

BN_EPS = 1e-5     # PyTorch BatchNorm2d default eps


# ----------------------------------------------------------------------------
# Pallas kernel: fused (Cout,K)@(K,TM) GEMM + bias + ReLU + affine (BN, eval)
# ----------------------------------------------------------------------------
def _phase_gemm_kernel(p_ref, w_ref, b_ref, scale_ref, shift_ref, o_ref):
    # p_ref: (K, TM) bf16    w_ref: (Cout, K) bf16
    # b/scale/shift: (Cout, 1) f32, broadcast along the lane (TM) axis.
    acc = jnp.dot(w_ref[...], p_ref[...], preferred_element_type=jnp.float32)
    acc = acc + b_ref[...]                               # ConvTranspose2d bias
    acc = jnp.maximum(acc, 0.0)                          # ReLU
    o_ref[...] = acc * scale_ref[...] + shift_ref[...]   # BatchNorm2d affine


def _round_up(v, m):
    return (v + m - 1) // m * m


def _fused_phase_gemm(patches, wmats, bias, scale, shift, *, block_m):
    """out[ph] = affine(relu(wmats[ph] @ patches[ph] + bias)), ph = 0..3."""
    n_ph, K, Mp = patches.shape
    Cout = wmats.shape[1]
    n_m = Mp // block_m

    def col(v):
        return v.reshape(Cout, 1).astype(jnp.float32)

    return pl.pallas_call(
        _phase_gemm_kernel,
        grid=(n_ph, n_m),
        in_specs=[
            pl.BlockSpec((None, K, block_m), lambda ph, m: (ph, 0, m)),
            pl.BlockSpec((None, Cout, K), lambda ph, m: (ph, 0, 0)),
            pl.BlockSpec((Cout, 1), lambda ph, m: (0, 0)),
            pl.BlockSpec((Cout, 1), lambda ph, m: (0, 0)),
            pl.BlockSpec((Cout, 1), lambda ph, m: (0, 0)),
        ],
        out_specs=pl.BlockSpec((None, Cout, block_m), lambda ph, m: (ph, 0, m)),
        out_shape=jax.ShapeDtypeStruct((n_ph, Cout, Mp), jnp.float32),
        compiler_params=pltpu.CompilerParams(
            dimension_semantics=("parallel", "parallel")),
    )(
        patches.astype(jnp.bfloat16),
        wmats.astype(jnp.bfloat16),
        col(bias), col(scale), col(shift),
    )


# ----------------------------------------------------------------------------
# ConvTranspose2d(k=4, s=2, p=1) + ReLU + per-channel affine (fused epilogue)
# ----------------------------------------------------------------------------
def conv_transpose_relu_affine(x, w, b, scale, shift, *, block_m=512):
    """affine(ReLU(ConvTranspose2d(x; w, b, k=4, s=2, p=1))), NCHW -> NCHW."""
    N, Cin, H, W = x.shape
    Cout = w.shape[1]
    M = N * H * W
    K = 4 * Cin

    # bf16 early: halves the HBM bytes of the patch-building glue as well.
    xp = jnp.pad(x.astype(jnp.bfloat16), ((0, 0), (0, 0), (1, 1), (1, 1)))

    # Sub-pixel decomposition: output pixel (2a+py, 2b+px) depends only on the
    # 2x2 window of the pad-1 input starting at (a+py, b+px), with weights
    # w[:, :, 3-py-2*dy, 3-px-2*dx] for window offsets (dy, dx) in {0,1}^2.
    patches, wmats = [], []
    for py in range(2):
        for px in range(2):
            taps, wsel = [], []
            for dy in range(2):
                for dx in range(2):
                    taps.append(xp[:, :, py + dy:py + dy + H,
                                   px + dx:px + dx + W])          # (N,Cin,H,W)
                    wsel.append(w[:, :, 3 - py - 2 * dy, 3 - px - 2 * dx])
            t = jnp.stack(taps, axis=0)                           # (4,N,Cin,H,W)
            patches.append(t.transpose(0, 2, 1, 3, 4).reshape(K, M))
            wm = jnp.stack(wsel, axis=0)                          # (4,Cin,Cout)
            wmats.append(wm.transpose(2, 0, 1).reshape(Cout, K))
    P = jnp.stack(patches, axis=0)          # (4, K, M),   K-order (dy, dx, ci)
    Wm = jnp.stack(wmats, axis=0)           # (4, Cout, K)

    # Lane-axis tiling (multiple of 128); pad M up so the grid divides evenly.
    block_m = min(block_m, _round_up(M, 128))
    Mp = _round_up(M, block_m)
    if Mp != M:
        P = jnp.pad(P, ((0, 0), (0, 0), (0, Mp - M)))

    out = _fused_phase_gemm(P, Wm, b, scale, shift, block_m=block_m)
    out = out[:, :, :M].reshape(2, 2, Cout, N, H, W)
    # Interleave phases: (py, px, co, n, h, w) -> (n, co, h, py, w, px) -> NCHW
    return out.transpose(3, 2, 4, 0, 5, 1).reshape(N, Cout, 2 * H, 2 * W)


# ----------------------------------------------------------------------------
# Full transconv_block forward (ConvT -> ReLU -> BatchNorm2d)
# ----------------------------------------------------------------------------
def transconv_block_forward(params, x, *, training=False, block_m=512):
    w, b = params["weight"], params["bias"]
    gamma, beta = params["bn_weight"], params["bn_bias"]
    rmean, rvar = params["bn_running_mean"], params["bn_running_var"]
    Cout = w.shape[1]

    if training:
        # Train-mode BN uses batch statistics of the post-ReLU activations:
        # keep the in-kernel affine as identity and normalize below in f32.
        scale = jnp.ones((Cout,), jnp.float32)
        shift = jnp.zeros((Cout,), jnp.float32)
    else:
        scale = gamma * jax.lax.rsqrt(rvar + BN_EPS)
        shift = beta - rmean * scale

    y = conv_transpose_relu_affine(x, w, b, scale, shift, block_m=block_m)

    if training:
        mean = jnp.mean(y, axis=(0, 2, 3), keepdims=True)
        var = jnp.var(y, axis=(0, 2, 3), keepdims=True)    # biased, as PyTorch
        y = (y - mean) * jax.lax.rsqrt(var + BN_EPS)
        y = y * gamma.reshape(1, -1, 1, 1) + beta.reshape(1, -1, 1, 1)
        # TODO(synk): the BatchNorm running_mean/running_var buffer update
        # (train-time module-state side effect) is not reproduced here.
    return y


# ----------------------------------------------------------------------------
# Parameters and a pure-JAX f32 reference (for the self-check)
# ----------------------------------------------------------------------------
def init_params(key, cin, cout):
    kw, kb, kg, kbe, km, kv = jax.random.split(key, 6)
    bound = 1.0 / jnp.sqrt(cin * 16.0)
    return {
        "weight": jax.random.uniform(kw, (cin, cout, 4, 4), jnp.float32,
                                     -bound, bound),
        "bias": jax.random.uniform(kb, (cout,), jnp.float32, -bound, bound),
        "bn_weight": 1.0 + 0.1 * jax.random.normal(kg, (cout,), jnp.float32),
        "bn_bias": 0.1 * jax.random.normal(kbe, (cout,), jnp.float32),
        "bn_running_mean": 0.1 * jax.random.normal(km, (cout,), jnp.float32),
        "bn_running_var": 1.0 + 0.1 * jax.random.uniform(kv, (cout,),
                                                         jnp.float32),
    }


def _ref_conv_transpose2d(x, w, b):
    """Direct scatter reference for ConvTranspose2d(k=4, s=2, p=1), f32."""
    N, Cin, H, W = x.shape
    Cout = w.shape[1]
    full = jnp.zeros((N, Cout, 2 * H + 2, 2 * W + 2), jnp.float32)
    for kh in range(4):
        for kw in range(4):
            contrib = jnp.einsum("ncij,cd->ndij", x, w[:, :, kh, kw])
            full = full.at[:, :, kh:kh + 2 * H:2, kw:kw + 2 * W:2].add(contrib)
    return full[:, :, 1:1 + 2 * H, 1:1 + 2 * W] + b.reshape(1, Cout, 1, 1)


def _ref_forward_eval(params, x):
    z = _ref_conv_transpose2d(x.astype(jnp.float32),
                              params["weight"], params["bias"])
    z = jnp.maximum(z, 0.0)
    scale = params["bn_weight"] * jax.lax.rsqrt(params["bn_running_var"]
                                                + BN_EPS)
    shift = params["bn_bias"] - params["bn_running_mean"] * scale
    return z * scale.reshape(1, -1, 1, 1) + shift.reshape(1, -1, 1, 1)


if __name__ == "__main__":
    key = jax.random.PRNGKey(0)
    pkey, xkey = jax.random.split(key)

    N, CIN, COUT, H, W = 2, 4, 8, 16, 16
    params = init_params(pkey, CIN, COUT)
    x = jax.random.normal(xkey, (N, CIN, H, W), jnp.float32)

    fwd = jax.jit(transconv_block_forward, static_argnames=("training",
                                                            "block_m"))

    # Eval-mode forward (fused Pallas path) vs pure-JAX f32 reference.
    y = jax.block_until_ready(fwd(params, x, training=False))
    assert y.shape == (N, COUT, 2 * H, 2 * W), y.shape
    assert y.dtype == jnp.float32
    ref = _ref_forward_eval(params, x)
    max_err = float(jnp.max(jnp.abs(y - ref)))
    tol = 5e-2 * max(1.0, float(jnp.max(jnp.abs(ref))))   # bf16-input drift
    assert max_err < tol, f"max abs err {max_err} exceeds tol {tol}"

    # Train-mode forward (batch-statistics BatchNorm) — exercise the 2nd path.
    yt = jax.block_until_ready(fwd(params, x, training=True))
    assert yt.shape == (N, COUT, 2 * H, 2 * W)
    assert bool(jnp.all(jnp.isfinite(yt)))

    print("KERNEL_OK")
</pallas_src>

<mosaic_0001>
module attributes {stable_mosaic.version = 11 : i64} {
  func.func @_phase_gemm_kernel(%arg0: i32, %arg1: i32, %arg2: memref<1x16x512xbf16, #tpu.memory_space<vmem>>, %arg3: memref<1x8x16xbf16, #tpu.memory_space<vmem>>, %arg4: memref<8x1xf32, #tpu.memory_space<vmem>>, %arg5: memref<8x1xf32, #tpu.memory_space<vmem>>, %arg6: memref<8x1xf32, #tpu.memory_space<vmem>>, %arg7: memref<1x8x512xf32, #tpu.memory_space<vmem>>) attributes {dimension_semantics = [#tpu.dimension_semantics<parallel>, #tpu.dimension_semantics<parallel>], iteration_bounds = array<i64: 4, 1>, scalar_prefetch = 0 : i64, scratch_operands = 0 : i64, tpu.core_type = #tpu.core_type<tc>, window_params = [{transform_indices = @transform_0, window_bounds = array<i64: 1, 16, 512>}, {transform_indices = @transform_1, window_bounds = array<i64: 1, 8, 16>}, {pipeline_mode = #tpu.pipeline_mode<synchronous>, transform_indices = @transform_2, window_bounds = array<i64: 8, 1>}, {pipeline_mode = #tpu.pipeline_mode<synchronous>, transform_indices = @transform_3, window_bounds = array<i64: 8, 1>}, {pipeline_mode = #tpu.pipeline_mode<synchronous>, transform_indices = @transform_4, window_bounds = array<i64: 8, 1>}, {transform_indices = @transform_5, window_bounds = array<i64: 1, 8, 512>}]} {
    %c0 = arith.constant 0 : index
    %c0_0 = arith.constant 0 : index
    %c0_1 = arith.constant 0 : index
    %0 = vector.load %arg3[%c0, %c0_0, %c0_1] : memref<1x8x16xbf16, #tpu.memory_space<vmem>>, vector<1x8x16xbf16>
    %1 = vector.shape_cast %0 : vector<1x8x16xbf16> to vector<8x16xbf16>
    %c0_2 = arith.constant 0 : index
    %c0_3 = arith.constant 0 : index
    %c0_4 = arith.constant 0 : index
    %2 = vector.load %arg2[%c0_2, %c0_3, %c0_4] : memref<1x16x512xbf16, #tpu.memory_space<vmem>>, vector<1x16x512xbf16>
    %3 = vector.shape_cast %2 : vector<1x16x512xbf16> to vector<16x512xbf16>
    %cst = arith.constant dense<0.000000e+00> : vector<8x512xf32>
    %4 = tpu.matmul %1, %3, %cst {dimension_numbers = #tpu.dot_dimension_numbers<[1], [0], [0], [1], [0, 0, 1, 1], [], []>} : vector<8x16xbf16>, vector<16x512xbf16>, vector<8x512xf32> -> vector<8x512xf32>
    %c0_5 = arith.constant 0 : index
    %c0_6 = arith.constant 0 : index
    %5 = vector.load %arg4[%c0_5, %c0_6] : memref<8x1xf32, #tpu.memory_space<vmem>>, vector<8x1xf32>
    %6 = vector.broadcast %5 : vector<8x1xf32> to vector<8x512xf32>
    %7 = arith.addf %4, %6 : vector<8x512xf32>
    %cst_7 = arith.constant 0.000000e+00 : f32
    %8 = vector.broadcast %cst_7 : f32 to vector<8x512xf32>
    %9 = arith.maximumf %7, %8 : vector<8x512xf32>
    %c0_8 = arith.constant 0 : index
    %c0_9 = arith.constant 0 : index
    %10 = vector.load %arg5[%c0_8, %c0_9] : memref<8x1xf32, #tpu.memory_space<vmem>>, vector<8x1xf32>
    %11 = vector.broadcast %10 : vector<8x1xf32> to vector<8x512xf32>
    %12 = arith.mulf %9, %11 : vector<8x512xf32>
    %c0_10 = arith.constant 0 : index
    %c0_11 = arith.constant 0 : index
    %13 = vector.load %arg6[%c0_10, %c0_11] : memref<8x1xf32, #tpu.memory_space<vmem>>, vector<8x1xf32>
    %14 = vector.broadcast %13 : vector<8x1xf32> to vector<8x512xf32>
    %15 = arith.addf %12, %14 : vector<8x512xf32>
    %c0_12 = arith.constant 0 : index
    %c0_13 = arith.constant 0 : index
    %c0_14 = arith.constant 0 : index
    %16 = vector.load %arg7[%c0_12, %c0_13, %c0_14] : memref<1x8x512xf32, #tpu.memory_space<vmem>>, vector<1x8x512xf32>
    %17 = vector.shape_cast %16 : vector<1x8x512xf32> to vector<8x512xf32>
    %18 = vector.shape_cast %15 : vector<8x512xf32> to vector<1x8x512xf32>
    tpu.vector_store %arg7[%c0_12, %c0_13, %c0_14], %18 {strides = array<i32>} : memref<1x8x512xf32, #tpu.memory_space<vmem>>, vector<1x8x512xf32>,
    return
  }
  func.func @transform_0(%arg0: i32, %arg1: i32) -> (i32, i32, i32) {
    %c0_i32 = arith.constant 0 : i32
    %c0_i32_0 = arith.constant 0 : i32
    return %arg0, %c0_i32, %arg1 : i32, i32, i32
  }
  func.func @transform_1(%arg0: i32, %arg1: i32) -> (i32, i32, i32) {
    %c0_i32 = arith.constant 0 : i32
    %c0_i32_0 = arith.constant 0 : i32
    %c0_i32_1 = arith.constant 0 : i32
    return %arg0, %c0_i32, %c0_i32_0 : i32, i32, i32
  }
  func.func @transform_2(%arg0: i32, %arg1: i32) -> (i32, i32) {
    %c0_i32 = arith.constant 0 : i32
    %c0_i32_0 = arith.constant 0 : i32
    %c0_i32_1 = arith.constant 0 : i32
    return %c0_i32, %c0_i32_0 : i32, i32
  }
  func.func @transform_3(%arg0: i32, %arg1: i32) -> (i32, i32) {
    %c0_i32 = arith.constant 0 : i32
    %c0_i32_0 = arith.constant 0 : i32
    %c0_i32_1 = arith.constant 0 : i32
    return %c0_i32, %c0_i32_0 : i32, i32
  }
  func.func @transform_4(%arg0: i32, %arg1: i32) -> (i32, i32) {
    %c0_i32 = arith.constant 0 : i32
    %c0_i32_0 = arith.constant 0 : i32
    %c0_i32_1 = arith.constant 0 : i32
    return %c0_i32, %c0_i32_0 : i32, i32
  }
  func.func @transform_5(%arg0: i32, %arg1: i32) -> (i32, i32, i32) {
    %c0_i32 = arith.constant 0 : i32
    %c0_i32_0 = arith.constant 0 : i32
    return %arg0, %c0_i32, %arg1 : i32, i32, i32
  }
}

</mosaic_0001>

<bundles_post_ra>
// kernel: transconv_block_forward.1
= control target key start
LH: loop header
LB: loop body
LE: loop exit
PB: predicated region body
PF: predicated region fallthrough
CT: control target
= control target key end

     0   :  { %s634_s18 = smov 0   ;;  %s636_s19 = smov 0   ;;  %s687_s0 = inlined_call_operand.vmem [shape: bf16[4,16,512], index: 0, kind: input, shape index: {}]   ;;  %s688_s1 = inlined_call_operand.vmem [shape: bf16[4,8,16], index: 1, kind: input, shape index: {}]   ;;  %s689_s2 = inlined_call_operand.vmem [shape: f32[8,1], index: 2, kind: input, shape index: {}]   ;;  %s690_s3 = inlined_call_operand.vmem [shape: f32[8,1], index: 3, kind: input, shape index: {}]   ;;  %s691_s4 = inlined_call_operand.vmem [shape: f32[8,1], index: 4, kind: input, shape index: {}]   ;;  %s692_s5 = inlined_call_operand.vmem [shape: f32[4,8,512], index: 5, kind: output, shape index: {}]  }
   0x1   :  { %s638_s20 = smov 0  }
   0x2 LB: > { %s27_s21 = sadd.s32 1, %s597_s19  ;;  %p530_p0 = scmp.ge.s32.totalorder %s601_s20, 1  ;;  %s601_s20 = sphi %s638_s20, %s15_s20   ;;  %s597_s19 = sphi %s636_s19, %s694_s19   ;;  %s593_s18 = sphi %s634_s18, %s693_s18  }
   0x3   : > { %p29_p1 = scmp.ge.s32.totalorder %s27_s21, 4  ;;  %p217_p2 = scmp.lt.s32.totalorder %s601_s20, 5 }
   0x5   : > { %s696_s21 = smov (%p29_p1, %s27_s21), 0  ;;  %p218_p3 = pnand %p530_p0, %p217_p2 }
   0x6   : > { %p258_p4 = scmp.lt.s32.totalorder (!%p218_p3), %s593_s18, 3  ;;  %v287_v0 = vld [vmem:[%s689_s2] sm:$0xff] (!%p218_p3)  ;;  %v603_v2 = vmov (!%p218_p3), 0   ;;  %vm313_vm0 = vcmask (!%p218_p3), 130048  }
   0x7   : > { %221 = sbr.rel (%p218_p3) target bundleno = 244 (0xf4), region = 40  ;;  %v413_v1 = vld [vmem:[%s691_s4] sm:$0xff] (!%p218_p3)  ;;  %349 = vmatprep.mubr.bf16.mxu0 (!%p218_p3), %v603_v2  ;;  %390 = vmatprep.mubr.bf16.mxu1 (!%p218_p3), %v603_v2 }
   0x8   : > { %571 = vset.pattern.permute.xlu0 (!%p218_p3), %v603_v2  ;;  %572 = vset.pattern.permute.xlu1 (!%p218_p3), %v603_v2  ;;  %v403_v3 = vld [vmem:[%s690_s3] sm:$0xff] (!%p218_p3) }
   0x9   : > { %290 = vperm.xlu0 (!%p218_p3), %571, %v287_v0   ;;  %416 = vperm.xlu1 (!%p218_p3), %572, %v413_v1  }
   0xd   : > { %406 = vperm.xlu0 (!%p218_p3), %571, %v403_v3  }
   0xe   : > { %s698_s18 = smov (!%p258_p4, %s593_s18), 3 }
   0xf   : > { %s544_s26 = sshll.u32 %s698_s18, 5  ;;  %s533_s27 = sshll.u32 %s698_s18, 2 }
  0x10   : > { %s265_s7 = scalar_lea.vmem %s687_s0, %s544_s26  ;;  %s270_s10 = scalar_lea.vmem %s688_s1, %s533_s27 }
  0x11   : > { %v573_v4 = vld [vmem:[%s265_s7 + $0x4] ss:$16 sps:$4 sm:$0xff]   ;;  %v575_v5 = vld [vmem:[%s265_s7 + $0xc] ss:$16 sps:$4 sm:$0xff]   ;;  %v577_v6 = vld [vmem:[%s265_s7] ss:$16 sps:$4 sm:$0xff]   ;;  %s279_s13 = scalar_lea.vmem %s692_s5, %s544_s26 }
  0x12   : > { %317 = vmatprep.subr.bf16.mxu0 %v573_v4  ;;  %v578_v7 = vld [vmem:[%s265_s7 + $0x8] ss:$16 sps:$4 sm:$0xff]   ;;  %358 = vmatprep.subr.bf16.mxu1 %v575_v5  ;;  %v282_v8 = vld [vmem:[%s270_s10] sm:$0xf] }
  0x13   : > { %318 = vmatpush1.bf16.msra.mxu0 %v577_v6  ;;  %359 = vmatpush1.bf16.msra.mxu1 %v578_v7 }
  0x16   : > { %540 = vmatmul.mubr.msk.bf16.vlgmr.msra.gmra.mrb[0].mxu0 %vm313_vm0, %v282_v8  ;;  %541 = vmatmul.mubr.msk.bf16.vlgmr.msra.gmra.mrb[0].mxu1 %vm313_vm0, %v282_v8 }
  0x88   : > { %v291_v9 = vpop.permute.xlu0 %290  ;;  %v417_v27 = vpop.permute.xlu1 %416 }
  0x8c   : > { %v407_v24 = vpop.permute.xlu0 %406 }
  0xe9   : > { %v351_v10 = vpop.f32.mrb[0].mxu0  ;;  %v392_v11 = vpop.f32.mrb[0].mxu1 }
  0xea   : > { %v352_v12 = vadd.f32 %v351_v10, %v291_v9  ;;  %v393_v13 = vadd.f32 %v392_v11, %v291_v9  ;;  %v353_v14 = vpop.f32.mrb[1].mxu0  ;;  %v394_v15 = vpop.f32.mrb[1].mxu1 }
  0xeb   : > { %v354_v16 = vadd.f32 %v353_v14, %v291_v9  ;;  %v395_v17 = vadd.f32 %v394_v15, %v291_v9  ;;  %v355_v18 = vpop.f32.mrb[2].mxu0  ;;  %v396_v19 = vpop.f32.mrb[2].mxu1 }
  0xec   : > { %v399_v20 = vmax.f32 %v352_v12, 0.0  ;;  %v401_v21 = vmax.f32 %v393_v13, 0.0  ;;  %v356_v22 = vpop.f32.mrb[3].mxu0  ;;  %v397_v23 = vpop.f32.mrb[3].mxu1 }
  0xed   : > { %v400_v25 = vmax.f32 %v354_v16, 0.0  ;;  %v402_v26 = vmax.f32 %v395_v17, 0.0 }
  0xee   : > { %v409_v28 = vmul.f32 %v407_v24, %v399_v20  ;;  %v411_v29 = vmul.f32 %v407_v24, %v401_v21 }
  0xef   : > { %v410_v30 = vmul.f32 %v407_v24, %v400_v25  ;;  %v412_v31 = vmul.f32 %v407_v24, %v402_v26 }
  0xf0   : > { %v419_v32 = vadd.f32 %v417_v27, %v409_v28  ;;  %v421_v33 = vadd.f32 %v417_v27, %v411_v29 }
  0xf1   : > { %v420_v34 = vadd.f32 %v417_v27, %v410_v30  ;;  %v422_v35 = vadd.f32 %v417_v27, %v412_v31 }
  0xf2   : > { %423 = vst [vmem:[%s279_s13] sm:$0xff] %v419_v32  ;;  %425 = vst [vmem:[%s279_s13 + $0x10] sm:$0xff] %v421_v33 }
  0xf3   : > { %424 = vst [vmem:[%s279_s13 + $0x8] sm:$0xff] %v420_v34  ;;  %426 = vst [vmem:[%s279_s13 + $0x18] sm:$0xff] %v422_v35 }
  0xf4 PF: > { %s15_s20 = sadd.s32 1, %s601_s20   ;;  %s693_s18 = smov %s597_s19 }
  0xf5   : > { %p12_p5 = scmp.ge.s32.totalorder %s15_s20, 6   ;;  %s694_s19 = smov %s696_s21 }
  0xf7   :  { %14 = sbr.rel (!%p12_p5) target bundleno = 2 (0x2), region = 73 }

</bundles_post_ra>
